<compile_context>
chip_gen: v7x
topology: tpu7x:2x2x1
jax: 0.10.0
libtpu: 0.0.40
codegen_flags: <defaults>
</compile_context>

<pallas_src>
import functools

import jax
import jax.numpy as jnp
from jax.experimental import pallas as pl
from jax.experimental.pallas import tpu as pltpu

_LANE = 128
_TARGET_TILE_BYTES = 4 * 1024 * 1024   # ~4 MiB input tile (v7x sweet spot, fine on v5e/v6e)
_SPLIT_BYTES = 2 * 1024 * 1024         # arrays above this get >=2 grid steps (v7x megacore)
_VMEM_LIMIT = 32 * 1024 * 1024         # 2 bufs x (in + out) x 4 MiB = 16 MiB << 32 MiB


def _smooth_sigmoid_kernel(scale_ref, x_ref, o_ref, *, k):
    # scale_ref: SMEM (1,) f32 (scalar prefetch); x_ref/o_ref: VMEM tiles in the original dtype.
    x = x_ref[...].astype(jnp.float32)
    half_s = 0.5 * scale_ref[0]
    # scale * sigmoid(k*x) == 0.5*scale * (1 + tanh(0.5*k*x))
    # -> one EUP transcendental per vreg; the extra mul/add ride the idle VPU slots.
    o_ref[...] = (half_s + half_s * jnp.tanh((0.5 * k) * x)).astype(o_ref.dtype)


def _launch(x2, scale, k, block_shape, grid, index_map, dtype):
    return pl.pallas_call(
        functools.partial(_smooth_sigmoid_kernel, k=float(k)),
        out_shape=jax.ShapeDtypeStruct(x2.shape, dtype),
        grid_spec=pltpu.PrefetchScalarGridSpec(
            num_scalar_prefetch=1,                      # scale lands in SMEM before the grid runs
            grid=grid,
            in_specs=[pl.BlockSpec(block_shape, index_map)],
            out_specs=pl.BlockSpec(block_shape, index_map),
        ),
        compiler_params=pltpu.CompilerParams(
            dimension_semantics=("parallel",),          # v7x: shard grid steps over 2 TCs
            vmem_limit_bytes=_VMEM_LIMIT,
        ),
    )(jnp.asarray(scale, jnp.float32).reshape(1), x2)


def smooth_sigmoid(x, scale, k=1.0):
    """Pallas SmoothSigmoid.forward: scale * 1/(1+exp(-k*x)).

    k is the construction-time slope (static Python float, baked into the kernel);
    scale is the learned parameter and is passed at runtime via SMEM scalar prefetch.
    """
    orig_shape = x.shape
    dtype = x.dtype
    n = x.size
    itemsize = jnp.dtype(dtype).itemsize
    flat = x.reshape(-1)

    if n % _LANE == 0:
        # Lane-dense 2D view: widest W (multiple of 128) dividing n that still yields
        # >= 8 rows for sublane packing; otherwise the widest divisor.
        W = None
        for w in (2048, 1024, 512, 256, 128):
            if n % w == 0:
                if W is None:
                    W = w
                if n // w >= 8:
                    W = w
                    break
        x2 = flat.reshape(-1, W)
        M = x2.shape[0]

        sub = max(8, 32 // itemsize)                  # sublane packing: f32->8, bf16->16, int8->32
        row_bytes = W * itemsize
        target_rows = max(sub, (_TARGET_TILE_BYTES // row_bytes) // sub * sub)
        if M > target_rows:
            tm = target_rows                          # multiple of sublane packing
        elif n * itemsize > _SPLIT_BYTES and M >= 2 * sub:
            # Mid-size array: force >= 2 grid steps so both v7x TensorCores get work.
            tm = pl.cdiv(pl.cdiv(M, 2), sub) * sub
        else:
            tm = M                                    # block == full dims (always legal)
        grid = (pl.cdiv(M, tm),)                      # partial last block masked by Pallas
        out2 = _launch(x2, scale, k, (tm, W), grid, lambda i, s: (i, 0), dtype)
    else:
        # Ragged size: free (1, n) view, no pad / slice HBM passes.  Pallas masks the
        # partial last lane block.  Sublane utilization is 1/8 here, but this corner is
        # still a single HBM pass in + out and only triggers for n % 128 != 0.
        x2 = flat.reshape(1, n)
        if n * itemsize <= _TARGET_TILE_BYTES:
            out2 = _launch(x2, scale, k, (1, n), (1,), lambda i, s: (0, 0), dtype)
        else:
            tile = (_TARGET_TILE_BYTES // itemsize) // _LANE * _LANE
            out2 = _launch(x2, scale, k, (1, tile), (pl.cdiv(n, tile),),
                           lambda i, s: (0, i), dtype)

    return out2.reshape(orig_shape)


if __name__ == "__main__":
    key = jax.random.PRNGKey(0)
    # Small NCHW-like input consistent with how the module would be used.
    x = jax.random.normal(key, (2, 4, 16, 16), dtype=jnp.float32)

    # Deterministic parameter init matching nn.Parameter(torch.tensor(1.0)).
    scale = jnp.float32(1.0)
    k = 1.0  # slope default

    out = jax.block_until_ready(smooth_sigmoid(x, scale, k=k))

    # Reference check in plain JAX (exact formulation now; no approx EUP ops).
    ref = scale * (1.0 / (1.0 + jnp.exp(-k * x)))
    assert out.shape == x.shape and out.dtype == x.dtype
    assert jnp.allclose(out, ref, atol=1e-4, rtol=1e-4)

    print("KERNEL_OK")
</pallas_src>

<mosaic_0001>
module attributes {stable_mosaic.version = 11 : i64} {
  func.func @_smooth_sigmoid_kernel(%arg0: i32, %arg1: memref<1xf32, #tpu.memory_space<smem>>, %arg2: memref<8x256xf32, #tpu.memory_space<vmem>>, %arg3: memref<8x256xf32, #tpu.memory_space<vmem>>) attributes {dimension_semantics = [#tpu.dimension_semantics<parallel>], iteration_bounds = array<i64: 1>, scalar_prefetch = 1 : i64, scratch_operands = 0 : i64, tpu.core_type = #tpu.core_type<tc>, window_params = [{transform_indices = @transform_0, window_bounds = array<i64: 8, 256>}, {transform_indices = @transform_1, window_bounds = array<i64: 8, 256>}]} {
    %c0 = arith.constant 0 : index
    %c0_0 = arith.constant 0 : index
    %0 = vector.load %arg2[%c0, %c0_0] : memref<8x256xf32, #tpu.memory_space<vmem>>, vector<8x256xf32>
    %c0_1 = arith.constant 0 : index
    %1 = memref.load %arg1[%c0_1] : memref<1xf32, #tpu.memory_space<smem>>
    %cst = arith.constant 5.000000e-01 : f32
    %2 = arith.mulf %cst, %1 : f32
    %cst_2 = arith.constant 5.000000e-01 : f32
    %3 = vector.broadcast %cst_2 : f32 to vector<8x256xf32>
    %4 = arith.mulf %3, %0 : vector<8x256xf32>
    %5 = math.tanh %4 : vector<8x256xf32>
    %6 = vector.broadcast %2 : f32 to vector<8x256xf32>
    %7 = arith.mulf %6, %5 : vector<8x256xf32>
    %8 = vector.broadcast %2 : f32 to vector<8x256xf32>
    %9 = arith.addf %8, %7 : vector<8x256xf32>
    %c0_3 = arith.constant 0 : index
    %c0_4 = arith.constant 0 : index
    %10 = vector.load %arg3[%c0_3, %c0_4] : memref<8x256xf32, #tpu.memory_space<vmem>>, vector<8x256xf32>
    tpu.vector_store %arg3[%c0_3, %c0_4], %9 {strides = array<i32>} : memref<8x256xf32, #tpu.memory_space<vmem>>, vector<8x256xf32>,
    return
  }
  func.func @transform_0(%arg0: i32, %arg1: memref<1xf32, #tpu.memory_space<smem>>) -> (i32, i32) {
    %c0_i32 = arith.constant 0 : i32
    %c0_i32_0 = arith.constant 0 : i32
    return %arg0, %c0_i32 : i32, i32
  }
  func.func @transform_1(%arg0: i32, %arg1: memref<1xf32, #tpu.memory_space<smem>>) -> (i32, i32) {
    %c0_i32 = arith.constant 0 : i32
    %c0_i32_0 = arith.constant 0 : i32
    return %arg0, %c0_i32 : i32, i32
  }
}

</mosaic_0001>

<bundles_post_ra>
// kernel: tpu_custom_call.1
= control target key start
LH: loop header
LB: loop body
LE: loop exit
PB: predicated region body
PF: predicated region fallthrough
CT: control target
= control target key end

     0   :  { %8 = vsyncpa [#allocation5], 0  ;;  %s151_s0 = inlined_call_operand.<no memory space> [shape: f32[1], index: 0, kind: input, shape index: {}]   ;;  %s152_s1 = inlined_call_operand.hbm [shape: f32[8,256], index: 1, kind: input, shape index: {}]   ;;  %s153_s2 = inlined_call_operand.hbm [shape: f32[8,256], index: 2, kind: output, shape index: {}]  }
   0x1   :  { %9 = vsyncpa [#allocation6], 0  ;;  %s107_s9 = smov [#allocation4]   ;;  %s59_s13 = scalar_lea.hbm %s152_s1, 256 }
   0x2   :  { %s16_s10 = sshll.u32 %s107_s9, 4  ;;  %p60_p0 = scmp.ne.s32.totalorder %s152_s1, %s59_s13  ;;  %s17_s10 = int_to_ptr.vmem [resolvable:$true] %s16_s10 }
   0x3   :  { %p63_p1 = scmp.lt.u32.totalorder %s59_s13, %s152_s1 }
   0x5   :  { %p65_p2 = pnand %p63_p1, %p60_p0 }
   0x7   :  { %68 = shalt.err (!%p65_p2)
}
   0x8   :  { %s69_s18 = scalar_lea.vmem %s17_s10, 256  ;;  %p74_p4 = scmp.lt.s32.totalorder %s17_s10, %s17_s10 }
   0x9   :  { %p70_p3 = scmp.ne.s32.totalorder %s17_s10, %s69_s18  ;;  %p75_p5 = scmp.lt.s32.totalorder %s69_s18, %s69_s18 }
   0xb   :  { %p76_p6 = por %p75_p5, %p74_p4 }
   0xd   :  { %p77_p7 = pnand %p76_p6, %p70_p3 }
   0xf   :  { %80 = shalt.err (!%p77_p7)
}
  0x10   :  { %19 = dma.hbm_to_vmem [thread:$0]  %s152_s1, 256, %s17_s10, [#allocation5]  }
  0x11   :  { %103 = dma.done.wait [#allocation5], 256  }
  0x12   :  { %104 = vsyncadd [#allocation5], 4294967040  ;;  %v23_v0 = vld [vmem:[#allocation4] sm:$0xff]  ;;  %v24_v1 = vld [vmem:[#allocation4 + $0x8] sm:$0xff]  ;;  %s26_s23 = smul.f32 0.5, %s151_s0  ;;  %s108_s24 = smov [#allocation7]  }
  0x13   :  { %v27_v2 = vmul.f32 0.5, %v23_v0  ;;  %v28_v3 = vmul.f32 0.5, %v24_v1  ;;  %s44_s25 = sshll.u32 %s108_s24, 4  ;;  %s45_s25 = int_to_ptr.vmem [resolvable:$true] %s44_s25 }
  0x14   :  { %v31_v4 = vstv %s26_s23  ;;  %s81_s1 = scalar_lea.vmem %s45_s25, 256  ;;  %p86_p9 = scmp.lt.s32.totalorder %s45_s25, %s45_s25 }
  0x15   :  { %55 = vtanh.f32 %v27_v2  ;;  %p82_p8 = scmp.ne.s32.totalorder %s45_s25, %s81_s1  ;;  %p87_p10 = scmp.lt.s32.totalorder %s81_s1, %s81_s1 }
  0x16   :  { %57 = vtanh.f32 %v28_v3 }
  0x17   :  { %p88_p11 = por %p87_p10, %p86_p9 }
  0x19   :  { %p89_p12 = pnand %p88_p11, %p82_p8 }
  0x1f   :  { %v56_v5 = vpop.eup %55 }
  0x20   :  { %v58_v6 = vpop.eup %57  ;;  %v32_v7 = vmul.f32 %v56_v5, %v31_v4 }
  0x21   :  { %v33_v8 = vmul.f32 %v58_v6, %v31_v4 }
  0x22   :  { %v34_v9 = vadd.f32 %v32_v7, %v31_v4 }
  0x23   :  { %v35_v10 = vadd.f32 %v33_v8, %v31_v4 }
  0x24   :  { %36 = vst [vmem:[#allocation7] sm:$0xff] %v34_v9 }
  0x25   :  { %37 = vst [vmem:[#allocation7 + $0x8] sm:$0xff] %v35_v10 }
  0x26   :  { %92 = shalt.err (!%p89_p12)
}
  0x27   :  { %s93_s27 = scalar_lea.hbm %s153_s2, 256 }
  0x28   :  { %p94_p13 = scmp.ne.s32.totalorder %s153_s2, %s93_s27  ;;  %p97_p0 = scmp.lt.u32.totalorder %s93_s27, %s153_s2 }
  0x2a   :  { %p99_p1 = pnand %p97_p0, %p94_p13 }
  0x2c   :  { %102 = shalt.err (!%p99_p1)
}
  0x2d   :  { %47 = dma.vmem_to_hbm [thread:$0]  %s45_s25, 256, %s153_s2, [#allocation6]  }
  0x2e   :  { %105 = dma.done.wait [#allocation6], 256  }
  0x2f   :  { %106 = vsyncadd [#allocation6], 4294967040 }
  0x30   :  { %51 = vsyncpa [#allocation5], 1 }
  0x31   :  { %52 = vsyncpa [#allocation6], 1 }

</bundles_post_ra>
